<compile_context>
chip_gen: v7x
topology: tpu7x:2x2x1
jax: 0.10.0
libtpu: 0.0.40
codegen_flags: <defaults>
</compile_context>

<pallas_src>
import functools
import math

import jax
import jax.numpy as jnp
from jax import lax
from jax.experimental import pallas as pl
from jax.experimental.pallas import tpu as pltpu

LANE = 128
BN_EPS = 1e-5


# ---------------------------------------------------------------------------
# helpers
# ---------------------------------------------------------------------------
def _round_up(n, m):
    return (n + m - 1) // m * m


def _pad2d(a, rows, cols, dtype):
    return jnp.pad(a, ((0, rows - a.shape[0]), (0, cols - a.shape[1]))).astype(dtype)


def _pad1d(a, cols, dtype):
    return jnp.pad(a, (0, cols - a.shape[0])).astype(dtype)


@functools.lru_cache(maxsize=1)
def _chip_vmem_bytes():
    """Physical VMEM of the local chip; conservative 64 MiB fallback (v7x per-core)."""
    try:
        return int(getattr(pltpu.get_tpu_info(), "vmem_capacity_bytes"))
    except Exception:
        return 64 << 20


# ---------------------------------------------------------------------------
# fused kernel (built per static config via closure)
# ---------------------------------------------------------------------------
def _build_mlp_kernel(num_layers, n_true, tile_m, h_p):
    n_hidden = num_layers - 1
    n_phases = num_layers                 # one phase per Linear; BN fused into next phase
    inv_n = 1.0 / float(n_true)
    mask_rows = (n_true % tile_m) != 0    # static: only mask when padded rows exist

    def kernel(*refs):
        x_ref = refs[0]                                # (tile_m, Din_p) bf16
        w_refs = refs[1:1 + num_layers]                # whole weights, bf16, VMEM-resident
        b_last_ref = refs[1 + num_layers]              # (1, Dout_p) f32
        gamma_ref = refs[2 + num_layers]               # (n_hidden, H_p) f32 (zero-padded!)
        beta_ref = refs[3 + num_layers]                # (n_hidden, H_p) f32
        o_ref = refs[4 + num_layers]                   # (tile_m, Dout_p) f32
        act_ref, ssum_ref, ssq_ref, scale_ref, shift_ref = refs[5 + num_layers:]

        p = pl.program_id(0)                           # phase == layer index
        t = pl.program_id(1)                           # batch tile
        row0 = pl.multiple_of(t * tile_m, tile_m)
        rows = pl.ds(row0, tile_m)

        def finalize_prev_bn(layer):
            # Fold layer `layer`'s full-batch BN statistics into scale/shift once per phase.
            mean = ssum_ref[...] * inv_n
            # E[h^2]-E[h]^2 form, clamped >= 0 against f32 cancellation.
            # TODO(synk): switch to a shifted / two-pass sum if |mean| >> std at scale.
            var = jnp.maximum(ssq_ref[...] * inv_n - mean * mean, 0.0)
            inv_std = lax.rsqrt(var + BN_EPS)
            scale = gamma_ref[pl.ds(layer, 1), :] * inv_std      # gamma folded into inv_std
            scale_ref[...] = scale
            shift_ref[...] = beta_ref[pl.ds(layer, 1), :] - mean * scale
            # Padded feature columns have var==0 -> huge inv_std, but gamma is
            # zero-padded so scale==shift==0 there. Gamma padding MUST stay zero.

        def layer_input(i):
            # bf16 (tile_m, K) tile feeding layer i's matmul.  For i>0 this applies the
            # previous layer's BN + ReLU on the fly (no separate apply phase) and zeroes
            # padded batch rows so the next layer's BN statistics stay exact.
            if i == 0:
                return x_ref[...]                                 # already bf16, zero rows
            h = act_ref[rows, :].astype(jnp.float32)
            y = jnp.maximum(h * scale_ref[...] + shift_ref[...], 0.0)
            if mask_rows:
                row_id = t * tile_m + lax.broadcasted_iota(jnp.int32, y.shape, 0)
                y = jnp.where(row_id < n_true, y, 0.0)
            return y.astype(jnp.bfloat16)

        def hidden_phase(i):
            @pl.when(p == i)
            def _():
                @pl.when(t == 0)
                def _():
                    if i > 0:
                        finalize_prev_bn(i - 1)
                    ssum_ref[...] = jnp.zeros_like(ssum_ref)
                    ssq_ref[...] = jnp.zeros_like(ssq_ref)

                a = layer_input(i)
                # Hidden-layer Linear bias intentionally dropped: it cancels exactly in
                # training-mode BatchNorm (mean subtraction).
                h = jnp.dot(a, w_refs[i][...],
                            preferred_element_type=jnp.float32)   # MXU, f32 acc
                ssum_ref[...] += jnp.sum(h, axis=0, keepdims=True)
                ssq_ref[...] += jnp.sum(h * h, axis=0, keepdims=True)
                act_ref[rows, :] = h.astype(jnp.bfloat16)          # bf16 slab store

        def final_phase():
            @pl.when(p == n_phases - 1)
            def _():
                @pl.when(t == 0)
                def _():
                    finalize_prev_bn(n_hidden - 1)
                a = layer_input(n_hidden)
                out = jnp.dot(a, w_refs[-1][...],
                              preferred_element_type=jnp.float32)
                o_ref[...] = (out + b_last_ref[...]).astype(o_ref.dtype)

        for i in range(n_hidden):
            hidden_phase(i)
        final_phase()

    return kernel, n_phases


# ---------------------------------------------------------------------------
# wrapper
# ---------------------------------------------------------------------------
@functools.partial(jax.jit, static_argnames=("tile_m",))
def mlp_forward_pallas(x, params, *, tile_m=None):
    n, din = x.shape
    num_layers = len(params)
    # TODO(synk): the module's num_layers == 1 branch is a single plain Linear and is
    # not covered by this fused BN kernel.
    assert num_layers >= 2
    n_hidden = num_layers - 1
    hidden = params[0][0].shape[1]
    dout = params[-1][0].shape[1]

    if tile_m is None:
        # MXU-sized default: 256 rows (v6e/v7x MXU pass), clipped to the (padded) batch.
        tile_m = min(256, _round_up(n, 16))
    assert tile_m % 16 == 0, "tile_m must be a multiple of 16 (bf16 sublane packing)"

    din_p = _round_up(din, LANE)
    h_p = _round_up(hidden, LANE)
    dout_p = _round_up(dout, LANE)
    n_p = _round_up(n, tile_m)
    n_tiles = n_p // tile_m

    # ---- pack / pad operands (lane-dense feature dims, bf16 matmul inputs) ----
    x_p = _pad2d(x, n_p, din_p, jnp.bfloat16)
    w_list = [_pad2d(params[0][0], din_p, h_p, jnp.bfloat16)]
    for i in range(1, n_hidden):
        w_list.append(_pad2d(params[i][0], h_p, h_p, jnp.bfloat16))
    w_list.append(_pad2d(params[-1][0], h_p, dout_p, jnp.bfloat16))
    b_last = _pad1d(params[-1][1], dout_p, jnp.float32).reshape(1, dout_p)
    # gamma/beta padding must stay zero so padded columns get scale = shift = 0.
    gammas = jnp.stack([_pad1d(params[i][2], h_p, jnp.float32) for i in range(n_hidden)])
    betas = jnp.stack([_pad1d(params[i][3], h_p, jnp.float32) for i in range(n_hidden)])

    kernel, n_phases = _build_mlp_kernel(num_layers, n, tile_m, h_p)

    def resident():
        # Whole array parked in VMEM, outside the pipeline -> single-buffered.
        return pl.BlockSpec(memory_space=pltpu.MemorySpace.VMEM)

    in_specs = (
        # x is only consumed in phase 0; afterwards pin the index to the last fetched
        # block so no dead re-DMA fires at the phase boundary.
        [pl.BlockSpec((tile_m, din_p),
                      lambda p, t: (jnp.where(p == 0, t, n_tiles - 1), 0))]
        + [resident() for _ in range(num_layers + 3)]
    )
    out_spec = pl.BlockSpec(
        (tile_m, dout_p),
        lambda p, t: (jnp.where(p == n_phases - 1, t, 0), 0))

    scratch_shapes = [
        pltpu.VMEM((n_p, h_p), jnp.bfloat16),   # activation slab (raw linear outputs)
        pltpu.VMEM((1, h_p), jnp.float32),      # per-column sum
        pltpu.VMEM((1, h_p), jnp.float32),      # per-column sum of squares
        pltpu.VMEM((1, h_p), jnp.float32),      # folded BN scale  (gamma * inv_std)
        pltpu.VMEM((1, h_p), jnp.float32),      # folded BN shift  (beta - mean*scale)
    ]

    # VMEM budget from the actual footprint, capped by the chip's physical VMEM.
    weight_bytes = sum(int(w.size) * 2 for w in w_list)
    small_bytes = (int(gammas.size) + int(betas.size) + int(b_last.size)) * 4
    est_vmem = (2 * tile_m * din_p * 2           # x tile, double-buffered
                + 2 * tile_m * dout_p * 4        # out tile, double-buffered
                + weight_bytes + small_bytes     # resident operands, single-buffered
                + n_p * h_p * 2                  # bf16 activation slab
                + 4 * h_p * 4)                   # BN stat / scale / shift scratch
    chip_vmem = _chip_vmem_bytes()
    vmem_limit = int(min(max(est_vmem + (8 << 20), 32 << 20), chip_vmem - (8 << 20)))

    flops = 2 * n_p * (din_p * h_p + max(num_layers - 2, 0) * h_p * h_p + h_p * dout_p)
    bytes_accessed = (int(x_p.size) * 2 + weight_bytes + small_bytes + n_p * dout_p * 4)

    out_p = pl.pallas_call(
        kernel,
        out_shape=jax.ShapeDtypeStruct((n_p, dout_p), jnp.float32),
        grid_spec=pltpu.PrefetchScalarGridSpec(
            num_scalar_prefetch=0,
            grid=(n_phases, n_tiles),
            in_specs=in_specs,
            out_specs=out_spec,
            scratch_shapes=scratch_shapes,
        ),
        compiler_params=pltpu.CompilerParams(
            dimension_semantics=("arbitrary", "arbitrary"),
            vmem_limit_bytes=vmem_limit,
        ),
        cost_estimate=pl.CostEstimate(
            flops=flops,
            transcendentals=n_hidden * h_p,
            bytes_accessed=bytes_accessed),
    )(x_p, *w_list, b_last, gammas, betas)

    return out_p[:n, :dout]


# ---------------------------------------------------------------------------
# params + pure-JAX references
# ---------------------------------------------------------------------------
def init_mlp_params(key, num_layers, input_dim, hidden_dim, output_dim):
    """PyTorch nn.Linear init U(-1/sqrt(fan_in), 1/sqrt(fan_in)); BN gamma=1, beta=0.
    Weights stored pre-transposed as (in_features, out_features)."""
    assert num_layers >= 2
    dims = [input_dim] + [hidden_dim] * (num_layers - 1) + [output_dim]
    params = []
    for i in range(num_layers):
        key, kw, kb = jax.random.split(key, 3)
        fan_in, fan_out = dims[i], dims[i + 1]
        bound = 1.0 / math.sqrt(fan_in)
        w_t = jax.random.uniform(kw, (fan_in, fan_out), jnp.float32,
                                 minval=-bound, maxval=bound)
        b = jax.random.uniform(kb, (fan_out,), jnp.float32,
                               minval=-bound, maxval=bound)
        if i < num_layers - 1:
            gamma = jnp.ones((fan_out,), jnp.float32)
            beta = jnp.zeros((fan_out,), jnp.float32)
            params.append((w_t, b, gamma, beta))
        else:
            params.append((w_t, b))
    return params


def mlp_forward_ref(x, params):
    """Exact f32 PyTorch-semantics reference (training-mode BN, hidden biases kept)."""
    h = x
    for (w_t, b, gamma, beta) in params[:-1]:
        h = h @ w_t + b
        mean = h.mean(axis=0, keepdims=True)
        var = ((h - mean) ** 2).mean(axis=0, keepdims=True)
        h = gamma * (h - mean) / jnp.sqrt(var + BN_EPS) + beta
        h = jnp.maximum(h, 0.0)
    w_t, b = params[-1]
    return h @ w_t + b


def mlp_forward_ref_bf16(x, params):
    """Reference mirroring the kernel's arithmetic exactly: bf16 matmul inputs, f32 acc,
    hidden biases dropped, BN stats from the f32 matmul result, bf16 slab round-trip,
    folded scale/shift BN form."""
    n = x.shape[0]
    a = x.astype(jnp.bfloat16)
    n_hidden = len(params) - 1
    for i in range(n_hidden):
        w_t, _, gamma, beta = params[i]
        z = jnp.dot(a, w_t.astype(jnp.bfloat16), preferred_element_type=jnp.float32)
        mean = jnp.sum(z, axis=0, keepdims=True) * (1.0 / n)
        var = jnp.maximum(jnp.sum(z * z, axis=0, keepdims=True) * (1.0 / n) - mean * mean, 0.0)
        inv_std = lax.rsqrt(var + BN_EPS)
        scale = gamma * inv_std
        shift = beta - mean * scale
        zb = z.astype(jnp.bfloat16).astype(jnp.float32)   # bf16 activation-slab round-trip
        y = jnp.maximum(zb * scale + shift, 0.0)
        a = y.astype(jnp.bfloat16)
    w_t, b = params[-1]
    return jnp.dot(a, w_t.astype(jnp.bfloat16), preferred_element_type=jnp.float32) + b


# ---------------------------------------------------------------------------
# demo / self-check
# ---------------------------------------------------------------------------
if __name__ == "__main__":
    key = jax.random.PRNGKey(0)
    kx, kp = jax.random.split(key)

    # MLP(num_layers=3, input_dim=16, hidden_dim=32, output_dim=8)
    num_layers, input_dim, hidden_dim, output_dim = 3, 16, 32, 8
    batch = 24   # not a multiple of tile_m -> exercises 2 batch tiles + row masking

    x = jax.random.normal(kx, (batch, input_dim), jnp.float32)
    params = init_mlp_params(kp, num_layers, input_dim, hidden_dim, output_dim)

    # Small tile_m to exercise the multi-tile + row-masking paths at tiny shapes.
    out = mlp_forward_pallas(x, params, tile_m=16)
    out = jax.block_until_ready(out)
    assert out.shape == (batch, output_dim)

    # Tight check vs. a reference emulating the kernel's bf16 arithmetic exactly.
    ref_bf16 = mlp_forward_ref_bf16(x, params)
    assert jnp.allclose(out, ref_bf16, atol=3e-3, rtol=3e-3), \
        float(jnp.max(jnp.abs(out - ref_bf16)))
    # Loose check vs. the exact f32 PyTorch-semantics reference.
    ref_f32 = mlp_forward_ref(x, params)
    assert jnp.allclose(out, ref_f32, atol=2e-1, rtol=2e-1), \
        float(jnp.max(jnp.abs(out - ref_f32)))

    # Also exercise the auto (MXU-sized, single-tile) tile_m path.
    out2 = jax.block_until_ready(mlp_forward_pallas(x, params))
    assert jnp.allclose(out2, ref_bf16, atol=3e-3, rtol=3e-3), \
        float(jnp.max(jnp.abs(out2 - ref_bf16)))

    print("KERNEL_OK")
</pallas_src>

<mosaic_0001>
module attributes {stable_mosaic.version = 11 : i64} {
  func.func @kernel(%arg0: i32, %arg1: i32, %arg2: memref<16x128xbf16, #tpu.memory_space<vmem>>, %arg3: memref<128x128xbf16, #tpu.memory_space<vmem>>, %arg4: memref<128x128xbf16, #tpu.memory_space<vmem>>, %arg5: memref<128x128xbf16, #tpu.memory_space<vmem>>, %arg6: memref<1x128xf32, #tpu.memory_space<vmem>>, %arg7: memref<2x128xf32, #tpu.memory_space<vmem>>, %arg8: memref<2x128xf32, #tpu.memory_space<vmem>>, %arg9: memref<16x128xf32, #tpu.memory_space<vmem>>, %arg10: memref<32x128xbf16, #tpu.memory_space<vmem>>, %arg11: memref<1x128xf32, #tpu.memory_space<vmem>>, %arg12: memref<1x128xf32, #tpu.memory_space<vmem>>, %arg13: memref<1x128xf32, #tpu.memory_space<vmem>>, %arg14: memref<1x128xf32, #tpu.memory_space<vmem>>) attributes {dimension_semantics = [#tpu.dimension_semantics<arbitrary>, #tpu.dimension_semantics<arbitrary>], iteration_bounds = array<i64: 3, 2>, scalar_prefetch = 0 : i64, scratch_operands = 5 : i64, tpu.core_type = #tpu.core_type<tc>, window_params = [{transform_indices = @transform_0, window_bounds = array<i64: 16, 128>}, {pipeline_mode = #tpu.pipeline_mode<synchronous>, transform_indices = @transform_1, window_bounds = array<i64: 128, 128>}, {pipeline_mode = #tpu.pipeline_mode<synchronous>, transform_indices = @transform_2, window_bounds = array<i64: 128, 128>}, {pipeline_mode = #tpu.pipeline_mode<synchronous>, transform_indices = @transform_3, window_bounds = array<i64: 128, 128>}, {pipeline_mode = #tpu.pipeline_mode<synchronous>, transform_indices = @transform_4, window_bounds = array<i64: 1, 128>}, {pipeline_mode = #tpu.pipeline_mode<synchronous>, transform_indices = @transform_5, window_bounds = array<i64: 2, 128>}, {pipeline_mode = #tpu.pipeline_mode<synchronous>, transform_indices = @transform_6, window_bounds = array<i64: 2, 128>}, {transform_indices = @transform_7, window_bounds = array<i64: 16, 128>}]} {
    %c16_i32 = arith.constant 16 : i32
    %0 = arith.muli %arg1, %c16_i32 : i32
    %1 = tpu.assume_multiple %0, 16 : i32
    %c0_i32 = arith.constant 0 : i32
    %2 = arith.cmpi eq, %arg0, %c0_i32 : i32
    %3 = arith.extui %2 : i1 to i32
    %c0_i32_0 = arith.constant 0 : i32
    %4 = arith.cmpi ne, %3, %c0_i32_0 : i32
    scf.if %4 {
      %c0_i32_3 = arith.constant 0 : i32
      %11 = arith.cmpi eq, %arg1, %c0_i32_3 : i32
      %12 = arith.extui %11 : i1 to i32
      %c0_i32_4 = arith.constant 0 : i32
      %13 = arith.cmpi ne, %12, %c0_i32_4 : i32
      scf.if %13 {
        %cst_19 = arith.constant 0.000000e+00 : f32
        %31 = vector.broadcast %cst_19 : f32 to vector<1x128xf32>
        %c0_20 = arith.constant 0 : index
        %c0_21 = arith.constant 0 : index
        %32 = vector.load %arg11[%c0_20, %c0_21] : memref<1x128xf32, #tpu.memory_space<vmem>>, vector<1x128xf32>
        tpu.vector_store %arg11[%c0_20, %c0_21], %31 {strides = array<i32>} : memref<1x128xf32, #tpu.memory_space<vmem>>, vector<1x128xf32>,
        %cst_22 = arith.constant 0.000000e+00 : f32
        %33 = vector.broadcast %cst_22 : f32 to vector<1x128xf32>
        %c0_23 = arith.constant 0 : index
        %c0_24 = arith.constant 0 : index
        %34 = vector.load %arg12[%c0_23, %c0_24] : memref<1x128xf32, #tpu.memory_space<vmem>>, vector<1x128xf32>
        tpu.vector_store %arg12[%c0_23, %c0_24], %33 {strides = array<i32>} : memref<1x128xf32, #tpu.memory_space<vmem>>, vector<1x128xf32>,
      } else {
      }
      %c0 = arith.constant 0 : index
      %c0_5 = arith.constant 0 : index
      %14 = vector.load %arg2[%c0, %c0_5] : memref<16x128xbf16, #tpu.memory_space<vmem>>, vector<16x128xbf16>
      %c0_6 = arith.constant 0 : index
      %c0_7 = arith.constant 0 : index
      %15 = vector.load %arg3[%c0_6, %c0_7] : memref<128x128xbf16, #tpu.memory_space<vmem>>, vector<128x128xbf16>
      %cst = arith.constant dense<0.000000e+00> : vector<16x128xf32>
      %16 = tpu.matmul %14, %15, %cst {dimension_numbers = #tpu.dot_dimension_numbers<[1], [0], [0], [1], [0, 0, 1, 1], [], []>} : vector<16x128xbf16>, vector<128x128xbf16>, vector<16x128xf32> -> vector<16x128xf32>
      %c0_8 = arith.constant 0 : index
      %c0_9 = arith.constant 0 : index
      %17 = vector.load %arg11[%c0_8, %c0_9] : memref<1x128xf32, #tpu.memory_space<vmem>>, vector<1x128xf32>
      %cst_10 = arith.constant dense<0.000000e+00> : vector<128xf32>
      %18 = vector.multi_reduction <add>, %16, %cst_10 [0] : vector<16x128xf32> to vector<128xf32>
      %19 = vector.shape_cast %18 : vector<128xf32> to vector<1x128xf32>
      %20 = arith.addf %17, %19 : vector<1x128xf32>
      %c0_11 = arith.constant 0 : index
      %c0_12 = arith.constant 0 : index
      %21 = vector.load %arg11[%c0_11, %c0_12] : memref<1x128xf32, #tpu.memory_space<vmem>>, vector<1x128xf32>
      tpu.vector_store %arg11[%c0_11, %c0_12], %20 {strides = array<i32>} : memref<1x128xf32, #tpu.memory_space<vmem>>, vector<1x128xf32>,
      %c0_13 = arith.constant 0 : index
      %c0_14 = arith.constant 0 : index
      %22 = vector.load %arg12[%c0_13, %c0_14] : memref<1x128xf32, #tpu.memory_space<vmem>>, vector<1x128xf32>
      %23 = arith.mulf %16, %16 : vector<16x128xf32>
      %cst_15 = arith.constant dense<0.000000e+00> : vector<128xf32>
      %24 = vector.multi_reduction <add>, %23, %cst_15 [0] : vector<16x128xf32> to vector<128xf32>
      %25 = vector.shape_cast %24 : vector<128xf32> to vector<1x128xf32>
      %26 = arith.addf %22, %25 : vector<1x128xf32>
      %c0_16 = arith.constant 0 : index
      %c0_17 = arith.constant 0 : index
      %27 = vector.load %arg12[%c0_16, %c0_17] : memref<1x128xf32, #tpu.memory_space<vmem>>, vector<1x128xf32>
      tpu.vector_store %arg12[%c0_16, %c0_17], %26 {strides = array<i32>} : memref<1x128xf32, #tpu.memory_space<vmem>>, vector<1x128xf32>,
      %28 = arith.truncf %16 : vector<16x128xf32> to vector<16x128xbf16>
      %29 = arith.index_cast %1 : i32 to index
      %c0_18 = arith.constant 0 : index
      %30 = vector.load %arg10[%29, %c0_18] : memref<32x128xbf16, #tpu.memory_space<vmem>>, vector<16x128xbf16>
      tpu.vector_store %arg10[%29, %c0_18], %28 {strides = array<i32>} : memref<32x128xbf16, #tpu.memory_space<vmem>>, vector<16x128xbf16>,
    } else {
    }
    %c1_i32 = arith.constant 1 : i32
    %5 = arith.cmpi eq, %arg0, %c1_i32 : i32
    %6 = arith.extui %5 : i1 to i32
    %c0_i32_1 = arith.constant 0 : i32
    %7 = arith.cmpi ne, %6, %c0_i32_1 : i32
    scf.if %7 {
      %c0_i32_3 = arith.constant 0 : i32
      %11 = arith.cmpi eq, %arg1, %c0_i32_3 : i32
      %12 = arith.extui %11 : i1 to i32
      %c0_i32_4 = arith.constant 0 : i32
      %13 = arith.cmpi ne, %12, %c0_i32_4 : i32
      scf.if %13 {
        %c0_25 = arith.constant 0 : index
        %c0_26 = arith.constant 0 : index
        %50 = vector.load %arg11[%c0_25, %c0_26] : memref<1x128xf32, #tpu.memory_space<vmem>>, vector<1x128xf32>
        %cst_27 = arith.constant 0.0416666679 : f32
        %51 = vector.broadcast %cst_27 : f32 to vector<1x128xf32>
        %52 = arith.mulf %50, %51 : vector<1x128xf32>
        %c0_28 = arith.constant 0 : index
        %c0_29 = arith.constant 0 : index
        %53 = vector.load %arg12[%c0_28, %c0_29] : memref<1x128xf32, #tpu.memory_space<vmem>>, vector<1x128xf32>
        %cst_30 = arith.constant 0.0416666679 : f32
        %54 = vector.broadcast %cst_30 : f32 to vector<1x128xf32>
        %55 = arith.mulf %53, %54 : vector<1x128xf32>
        %56 = arith.mulf %52, %52 : vector<1x128xf32>
        %57 = arith.subf %55, %56 : vector<1x128xf32>
        %cst_31 = arith.constant 0.000000e+00 : f32
        %58 = vector.broadcast %cst_31 : f32 to vector<1x128xf32>
        %59 = arith.maximumf %57, %58 : vector<1x128xf32>
        %cst_32 = arith.constant 9.99999974E-6 : f32
        %60 = vector.broadcast %cst_32 : f32 to vector<1x128xf32>
        %61 = arith.addf %59, %60 : vector<1x128xf32>
        %62 = math.rsqrt %61 : vector<1x128xf32>
        %c0_33 = arith.constant 0 : index
        %c0_34 = arith.constant 0 : index
        %63 = vector.load %arg7[%c0_33, %c0_34] : memref<2x128xf32, #tpu.memory_space<vmem>>, vector<1x128xf32>
        %64 = arith.mulf %63, %62 : vector<1x128xf32>
        %c0_35 = arith.constant 0 : index
        %c0_36 = arith.constant 0 : index
        %65 = vector.load %arg13[%c0_35, %c0_36] : memref<1x128xf32, #tpu.memory_space<vmem>>, vector<1x128xf32>
        tpu.vector_store %arg13[%c0_35, %c0_36], %64 {strides = array<i32>} : memref<1x128xf32, #tpu.memory_space<vmem>>, vector<1x128xf32>,
        %c0_37 = arith.constant 0 : index
        %c0_38 = arith.constant 0 : index
        %66 = vector.load %arg8[%c0_37, %c0_38] : memref<2x128xf32, #tpu.memory_space<vmem>>, vector<1x128xf32>
        %67 = arith.mulf %52, %64 : vector<1x128xf32>
        %68 = arith.subf %66, %67 : vector<1x128xf32>
        %c0_39 = arith.constant 0 : index
        %c0_40 = arith.constant 0 : index
        %69 = vector.load %arg14[%c0_39, %c0_40] : memref<1x128xf32, #tpu.memory_space<vmem>>, vector<1x128xf32>
        tpu.vector_store %arg14[%c0_39, %c0_40], %68 {strides = array<i32>} : memref<1x128xf32, #tpu.memory_space<vmem>>, vector<1x128xf32>,
        %cst_41 = arith.constant 0.000000e+00 : f32
        %70 = vector.broadcast %cst_41 : f32 to vector<1x128xf32>
        %c0_42 = arith.constant 0 : index
        %c0_43 = arith.constant 0 : index
        %71 = vector.load %arg11[%c0_42, %c0_43] : memref<1x128xf32, #tpu.memory_space<vmem>>, vector<1x128xf32>
        tpu.vector_store %arg11[%c0_42, %c0_43], %70 {strides = array<i32>} : memref<1x128xf32, #tpu.memory_space<vmem>>, vector<1x128xf32>,
        %cst_44 = arith.constant 0.000000e+00 : f32
        %72 = vector.broadcast %cst_44 : f32 to vector<1x128xf32>
        %c0_45 = arith.constant 0 : index
        %c0_46 = arith.constant 0 : index
        %73 = vector.load %arg12[%c0_45, %c0_46] : memref<1x128xf32, #tpu.memory_space<vmem>>, vector<1x128xf32>
        tpu.vector_store %arg12[%c0_45, %c0_46], %72 {strides = array<i32>} : memref<1x128xf32, #tpu.memory_space<vmem>>, vector<1x128xf32>,
      } else {
      }
      %14 = arith.index_cast %1 : i32 to index
      %c0 = arith.constant 0 : index
      %15 = vector.load %arg10[%14, %c0] : memref<32x128xbf16, #tpu.memory_space<vmem>>, vector<16x128xbf16>
      %16 = arith.extf %15 : vector<16x128xbf16> to vector<16x128xf32>
      %c0_5 = arith.constant 0 : index
      %c0_6 = arith.constant 0 : index
      %17 = vector.load %arg13[%c0_5, %c0_6] : memref<1x128xf32, #tpu.memory_space<vmem>>, vector<1x128xf32>
      %18 = vector.broadcast %17 : vector<1x128xf32> to vector<16x128xf32>
      %19 = arith.mulf %16, %18 : vector<16x128xf32>
      %c0_7 = arith.constant 0 : index
      %c0_8 = arith.constant 0 : index
      %20 = vector.load %arg14[%c0_7, %c0_8] : memref<1x128xf32, #tpu.memory_space<vmem>>, vector<1x128xf32>
      %21 = vector.broadcast %20 : vector<1x128xf32> to vector<16x128xf32>
      %22 = arith.addf %19, %21 : vector<16x128xf32>
      %cst = arith.constant 0.000000e+00 : f32
      %23 = vector.broadcast %cst : f32 to vector<16x128xf32>
      %24 = arith.maximumf %22, %23 : vector<16x128xf32>
      %c16_i32_9 = arith.constant 16 : i32
      %25 = arith.muli %arg1, %c16_i32_9 : i32
      %26 = tpu.iota {dimensions = array<i32: 0>} : vector<16x128xi32>
      %27 = vector.broadcast %25 : i32 to vector<16x128xi32>
      %28 = arith.addi %27, %26 : vector<16x128xi32>
      %c24_i32 = arith.constant 24 : i32
      %29 = vector.broadcast %c24_i32 : i32 to vector<16x128xi32>
      %30 = arith.cmpi slt, %28, %29 : vector<16x128xi32>
      %cst_10 = arith.constant 0.000000e+00 : f32
      %31 = vector.broadcast %cst_10 : f32 to vector<16x128xf32>
      %32 = arith.select %30, %24, %31 : vector<16x128xi1>, vector<16x128xf32>
      %33 = arith.truncf %32 : vector<16x128xf32> to vector<16x128xbf16>
      %c0_11 = arith.constant 0 : index
      %c0_12 = arith.constant 0 : index
      %34 = vector.load %arg4[%c0_11, %c0_12] : memref<128x128xbf16, #tpu.memory_space<vmem>>, vector<128x128xbf16>
      %cst_13 = arith.constant dense<0.000000e+00> : vector<16x128xf32>
      %35 = tpu.matmul %33, %34, %cst_13 {dimension_numbers = #tpu.dot_dimension_numbers<[1], [0], [0], [1], [0, 0, 1, 1], [], []>} : vector<16x128xbf16>, vector<128x128xbf16>, vector<16x128xf32> -> vector<16x128xf32>
      %c0_14 = arith.constant 0 : index
      %c0_15 = arith.constant 0 : index
      %36 = vector.load %arg11[%c0_14, %c0_15] : memref<1x128xf32, #tpu.memory_space<vmem>>, vector<1x128xf32>
      %cst_16 = arith.constant dense<0.000000e+00> : vector<128xf32>
      %37 = vector.multi_reduction <add>, %35, %cst_16 [0] : vector<16x128xf32> to vector<128xf32>
      %38 = vector.shape_cast %37 : vector<128xf32> to vector<1x128xf32>
      %39 = arith.addf %36, %38 : vector<1x128xf32>
      %c0_17 = arith.constant 0 : index
      %c0_18 = arith.constant 0 : index
      %40 = vector.load %arg11[%c0_17, %c0_18] : memref<1x128xf32, #tpu.memory_space<vmem>>, vector<1x128xf32>
      tpu.vector_store %arg11[%c0_17, %c0_18], %39 {strides = array<i32>} : memref<1x128xf32, #tpu.memory_space<vmem>>, vector<1x128xf32>,
      %c0_19 = arith.constant 0 : index
      %c0_20 = arith.constant 0 : index
      %41 = vector.load %arg12[%c0_19, %c0_20] : memref<1x128xf32, #tpu.memory_space<vmem>>, vector<1x128xf32>
      %42 = arith.mulf %35, %35 : vector<16x128xf32>
      %cst_21 = arith.constant dense<0.000000e+00> : vector<128xf32>
      %43 = vector.multi_reduction <add>, %42, %cst_21 [0] : vector<16x128xf32> to vector<128xf32>
      %44 = vector.shape_cast %43 : vector<128xf32> to vector<1x128xf32>
      %45 = arith.addf %41, %44 : vector<1x128xf32>
      %c0_22 = arith.constant 0 : index
      %c0_23 = arith.constant 0 : index
      %46 = vector.load %arg12[%c0_22, %c0_23] : memref<1x128xf32, #tpu.memory_space<vmem>>, vector<1x128xf32>
      tpu.vector_store %arg12[%c0_22, %c0_23], %45 {strides = array<i32>} : memref<1x128xf32, #tpu.memory_space<vmem>>, vector<1x128xf32>,
      %47 = arith.truncf %35 : vector<16x128xf32> to vector<16x128xbf16>
      %48 = arith.index_cast %1 : i32 to index
      %c0_24 = arith.constant 0 : index
      %49 = vector.load %arg10[%48, %c0_24] : memref<32x128xbf16, #tpu.memory_space<vmem>>, vector<16x128xbf16>
      tpu.vector_store %arg10[%48, %c0_24], %47 {strides = array<i32>} : memref<32x128xbf16, #tpu.memory_space<vmem>>, vector<16x128xbf16>,
    } else {
    }
    %c2_i32 = arith.constant 2 : i32
    %8 = arith.cmpi eq, %arg0, %c2_i32 : i32
    %9 = arith.extui %8 : i1 to i32
    %c0_i32_2 = arith.constant 0 : i32
    %10 = arith.cmpi ne, %9, %c0_i32_2 : i32
    scf.if %10 {
      %c0_i32_3 = arith.constant 0 : i32
      %11 = arith.cmpi eq, %arg1, %c0_i32_3 : i32
      %12 = arith.extui %11 : i1 to i32
      %c0_i32_4 = arith.constant 0 : i32
      %13 = arith.cmpi ne, %12, %c0_i32_4 : i32
      scf.if %13 {
        %c0_18 = arith.constant 0 : index
        %c0_19 = arith.constant 0 : index
        %40 = vector.load %arg11[%c0_18, %c0_19] : memref<1x128xf32, #tpu.memory_space<vmem>>, vector<1x128xf32>
        %cst_20 = arith.constant 0.0416666679 : f32
        %41 = vector.broadcast %cst_20 : f32 to vector<1x128xf32>
        %42 = arith.mulf %40, %41 : vector<1x128xf32>
        %c0_21 = arith.constant 0 : index
        %c0_22 = arith.constant 0 : index
        %43 = vector.load %arg12[%c0_21, %c0_22] : memref<1x128xf32, #tpu.memory_space<vmem>>, vector<1x128xf32>
        %cst_23 = arith.constant 0.0416666679 : f32
        %44 = vector.broadcast %cst_23 : f32 to vector<1x128xf32>
        %45 = arith.mulf %43, %44 : vector<1x128xf32>
        %46 = arith.mulf %42, %42 : vector<1x128xf32>
        %47 = arith.subf %45, %46 : vector<1x128xf32>
        %cst_24 = arith.constant 0.000000e+00 : f32
        %48 = vector.broadcast %cst_24 : f32 to vector<1x128xf32>
        %49 = arith.maximumf %47, %48 : vector<1x128xf32>
        %cst_25 = arith.constant 9.99999974E-6 : f32
        %50 = vector.broadcast %cst_25 : f32 to vector<1x128xf32>
        %51 = arith.addf %49, %50 : vector<1x128xf32>
        %52 = math.rsqrt %51 : vector<1x128xf32>
        %c1 = arith.constant 1 : index
        %c0_26 = arith.constant 0 : index
        %53 = vector.load %arg7[%c1, %c0_26] : memref<2x128xf32, #tpu.memory_space<vmem>>, vector<1x128xf32>
        %54 = arith.mulf %53, %52 : vector<1x128xf32>
        %c0_27 = arith.constant 0 : index
        %c0_28 = arith.constant 0 : index
        %55 = vector.load %arg13[%c0_27, %c0_28] : memref<1x128xf32, #tpu.memory_space<vmem>>, vector<1x128xf32>
        tpu.vector_store %arg13[%c0_27, %c0_28], %54 {strides = array<i32>} : memref<1x128xf32, #tpu.memory_space<vmem>>, vector<1x128xf32>,
        %c1_29 = arith.constant 1 : index
        %c0_30 = arith.constant 0 : index
        %56 = vector.load %arg8[%c1_29, %c0_30] : memref<2x128xf32, #tpu.memory_space<vmem>>, vector<1x128xf32>
        %57 = arith.mulf %42, %54 : vector<1x128xf32>
        %58 = arith.subf %56, %57 : vector<1x128xf32>
        %c0_31 = arith.constant 0 : index
        %c0_32 = arith.constant 0 : index
        %59 = vector.load %arg14[%c0_31, %c0_32] : memref<1x128xf32, #tpu.memory_space<vmem>>, vector<1x128xf32>
        tpu.vector_store %arg14[%c0_31, %c0_32], %58 {strides = array<i32>} : memref<1x128xf32, #tpu.memory_space<vmem>>, vector<1x128xf32>,
      } else {
      }
      %14 = arith.index_cast %1 : i32 to index
      %c0 = arith.constant 0 : index
      %15 = vector.load %arg10[%14, %c0] : memref<32x128xbf16, #tpu.memory_space<vmem>>, vector<16x128xbf16>
      %16 = arith.extf %15 : vector<16x128xbf16> to vector<16x128xf32>
      %c0_5 = arith.constant 0 : index
      %c0_6 = arith.constant 0 : index
      %17 = vector.load %arg13[%c0_5, %c0_6] : memref<1x128xf32, #tpu.memory_space<vmem>>, vector<1x128xf32>
      %18 = vector.broadcast %17 : vector<1x128xf32> to vector<16x128xf32>
      %19 = arith.mulf %16, %18 : vector<16x128xf32>
      %c0_7 = arith.constant 0 : index
      %c0_8 = arith.constant 0 : index
      %20 = vector.load %arg14[%c0_7, %c0_8] : memref<1x128xf32, #tpu.memory_space<vmem>>, vector<1x128xf32>
      %21 = vector.broadcast %20 : vector<1x128xf32> to vector<16x128xf32>
      %22 = arith.addf %19, %21 : vector<16x128xf32>
      %cst = arith.constant 0.000000e+00 : f32
      %23 = vector.broadcast %cst : f32 to vector<16x128xf32>
      %24 = arith.maximumf %22, %23 : vector<16x128xf32>
      %c16_i32_9 = arith.constant 16 : i32
      %25 = arith.muli %arg1, %c16_i32_9 : i32
      %26 = tpu.iota {dimensions = array<i32: 0>} : vector<16x128xi32>
      %27 = vector.broadcast %25 : i32 to vector<16x128xi32>
      %28 = arith.addi %27, %26 : vector<16x128xi32>
      %c24_i32 = arith.constant 24 : i32
      %29 = vector.broadcast %c24_i32 : i32 to vector<16x128xi32>
      %30 = arith.cmpi slt, %28, %29 : vector<16x128xi32>
      %cst_10 = arith.constant 0.000000e+00 : f32
      %31 = vector.broadcast %cst_10 : f32 to vector<16x128xf32>
      %32 = arith.select %30, %24, %31 : vector<16x128xi1>, vector<16x128xf32>
      %33 = arith.truncf %32 : vector<16x128xf32> to vector<16x128xbf16>
      %c0_11 = arith.constant 0 : index
      %c0_12 = arith.constant 0 : index
      %34 = vector.load %arg5[%c0_11, %c0_12] : memref<128x128xbf16, #tpu.memory_space<vmem>>, vector<128x128xbf16>
      %cst_13 = arith.constant dense<0.000000e+00> : vector<16x128xf32>
      %35 = tpu.matmul %33, %34, %cst_13 {dimension_numbers = #tpu.dot_dimension_numbers<[1], [0], [0], [1], [0, 0, 1, 1], [], []>} : vector<16x128xbf16>, vector<128x128xbf16>, vector<16x128xf32> -> vector<16x128xf32>
      %c0_14 = arith.constant 0 : index
      %c0_15 = arith.constant 0 : index
      %36 = vector.load %arg6[%c0_14, %c0_15] : memref<1x128xf32, #tpu.memory_space<vmem>>, vector<1x128xf32>
      %37 = vector.broadcast %36 : vector<1x128xf32> to vector<16x128xf32>
      %38 = arith.addf %35, %37 : vector<16x128xf32>
      %c0_16 = arith.constant 0 : index
      %c0_17 = arith.constant 0 : index
      %39 = vector.load %arg9[%c0_16, %c0_17] : memref<16x128xf32, #tpu.memory_space<vmem>>, vector<16x128xf32>
      tpu.vector_store %arg9[%c0_16, %c0_17], %38 {strides = array<i32>} : memref<16x128xf32, #tpu.memory_space<vmem>>, vector<16x128xf32>,
    } else {
    }
    return
  }
  func.func @transform_0(%arg0: i32, %arg1: i32) -> (i32, i32) {
    %c0_i32 = arith.constant 0 : i32
    %0 = arith.cmpi eq, %arg0, %c0_i32 : i32
    %c1_i32 = arith.constant 1 : i32
    %1 = arith.select %0, %arg1, %c1_i32 : i32
    %c0_i32_0 = arith.constant 0 : i32
    %c0_i32_1 = arith.constant 0 : i32
    return %1, %c0_i32_0 : i32, i32
  }
  func.func @transform_1(%arg0: i32, %arg1: i32) -> (i32, i32) {
    %c0_i32 = arith.constant 0 : i32
    %c0_i32_0 = arith.constant 0 : i32
    %c0_i32_1 = arith.constant 0 : i32
    return %c0_i32, %c0_i32_0 : i32, i32
  }
  func.func @transform_2(%arg0: i32, %arg1: i32) -> (i32, i32) {
    %c0_i32 = arith.constant 0 : i32
    %c0_i32_0 = arith.constant 0 : i32
    %c0_i32_1 = arith.constant 0 : i32
    return %c0_i32, %c0_i32_0 : i32, i32
  }
  func.func @transform_3(%arg0: i32, %arg1: i32) -> (i32, i32) {
    %c0_i32 = arith.constant 0 : i32
    %c0_i32_0 = arith.constant 0 : i32
    %c0_i32_1 = arith.constant 0 : i32
    return %c0_i32, %c0_i32_0 : i32, i32
  }
  func.func @transform_4(%arg0: i32, %arg1: i32) -> (i32, i32) {
    %c0_i32 = arith.constant 0 : i32
    %c0_i32_0 = arith.constant 0 : i32
    %c0_i32_1 = arith.constant 0 : i32
    return %c0_i32, %c0_i32_0 : i32, i32
  }
  func.func @transform_5(%arg0: i32, %arg1: i32) -> (i32, i32) {
    %c0_i32 = arith.constant 0 : i32
    %c0_i32_0 = arith.constant 0 : i32
    %c0_i32_1 = arith.constant 0 : i32
    return %c0_i32, %c0_i32_0 : i32, i32
  }
  func.func @transform_6(%arg0: i32, %arg1: i32) -> (i32, i32) {
    %c0_i32 = arith.constant 0 : i32
    %c0_i32_0 = arith.constant 0 : i32
    %c0_i32_1 = arith.constant 0 : i32
    return %c0_i32, %c0_i32_0 : i32, i32
  }
  func.func @transform_7(%arg0: i32, %arg1: i32) -> (i32, i32) {
    %c2_i32 = arith.constant 2 : i32
    %0 = arith.cmpi eq, %arg0, %c2_i32 : i32
    %c0_i32 = arith.constant 0 : i32
    %1 = arith.select %0, %arg1, %c0_i32 : i32
    %c0_i32_0 = arith.constant 0 : i32
    %c0_i32_1 = arith.constant 0 : i32
    return %1, %c0_i32_0 : i32, i32
  }
}

</mosaic_0001>

<bundles_post_ra>
// kernel: mlp_forward_pallas.1
= control target key start
LH: loop header
LB: loop body
LE: loop exit
PB: predicated region body
PF: predicated region fallthrough
CT: control target
= control target key end

     0   :  { %s1229_s24 = smov 0   ;;  %s1231_s25 = smov 0   ;;  %s1403_s0 = inlined_call_operand.vmem [shape: bf16[32,128], index: 0, kind: input, shape index: {}]   ;;  %s1404_s1 = inlined_call_operand.vmem [shape: bf16[128,128], index: 1, kind: input, shape index: {}]   ;;  %s1405_s2 = inlined_call_operand.vmem [shape: bf16[128,128], index: 2, kind: input, shape index: {}]   ;;  %s1406_s3 = inlined_call_operand.vmem [shape: bf16[128,128], index: 3, kind: input, shape index: {}]   ;;  %s1407_s4 = inlined_call_operand.vmem [shape: f32[1,128], index: 4, kind: input, shape index: {}]   ;;  %s1408_s5 = inlined_call_operand.vmem [shape: f32[2,128], index: 5, kind: input, shape index: {}]   ;;  %s1409_s6 = inlined_call_operand.vmem [shape: f32[2,128], index: 6, kind: input, shape index: {}]   ;;  %s1410_s7 = inlined_call_operand.vmem [shape: f32[32,128], index: 7, kind: output, shape index: {}]  }
   0x1   :  { %s1233_s26 = smov 0   ;;  %s1235_s27 = smov 0  }
   0x2   :  { %s1237_s28 = smov 0  }
   0x3 LB: > { %s26_s29 = sadd.s32 1, %s1171_s26  ;;  %s29_s30 = sadd.s32 1, %s1175_s27  ;;  %s1179_s28 = sphi %s1237_s28, %s17_s28   ;;  %s1175_s27 = sphi %s1235_s27, %s1414_s27   ;;  %s1171_s26 = sphi %s1233_s26, %s1413_s26   ;;  %s1167_s25 = sphi %s1231_s25, %s1412_s25   ;;  %s1163_s24 = sphi %s1229_s24, %s1411_s24  }
   0x4   : > { %p27_p0 = scmp.ge.s32.totalorder %s26_s29, 2  ;;  %p924_p1 = scmp.ge.s32.totalorder %s1179_s28, 1 }
   0x5   : > { %p262_p2 = scmp.lt.s32.totalorder %s1179_s28, 7 }
   0x6   : > { %s1416_s29 = smov (%p27_p0, %s26_s29), 0  ;;  %s1418_s30 = smov (!%p27_p0, %s29_s30), %s1175_s27 }
   0x7   : > { %p263_p3 = pnand %p924_p1, %p262_p2  ;;  %p31_p4 = scmp.ge.s32.totalorder %s1418_s30, 3 }
   0x8   : > { %p298_p5 = scmp.eq.s32.totalorder (!%p263_p3), %s1167_s25, 0  ;;  %p308_p6 = scmp.eq.s32.totalorder (!%p263_p3), %s1167_s25, 2 }
   0x9   : > { %s1420_s30 = smov (%p31_p4, %s1418_s30), 0  ;;  %266 = sbr.rel (%p263_p3) target bundleno = 890 (0x37a), region = 48 }
   0xa   : > { %s1266_s8 = sshll.u32 (!%p263_p3), %s1163_s24, 4  ;;  %p930_p9 = scmp.ne.s32.totalorder (!%p263_p3), %s1167_s25, 0 }
  0x10   : > { %s299_s9 = scalar_select %p298_p5, %s1163_s24, 1 }
  0x11   : > { %s309_s10 = scalar_select %p308_p6, %s1163_s24, 0 }
  0x12   : > { %s925_s11 = sshll.u32 %s299_s9, 1  ;;  %323 = sbr.rel (%p930_p9) target bundleno = 298 (0x12a), region = 52 }
  0x13   : > { %p301_p7 = scmp.lt.s32.totalorder %s925_s11, 3  ;;  %s927_s12 = sshll.u32 %s309_s10, 1 }
  0x14   : > { %p311_p8 = scmp.lt.s32.totalorder %s927_s12, 3  ;;  %p931_p10 = scmp.ne.s32.totalorder (!%p930_p9), %s1163_s24, 0 }
  0x15   : > { %s1422_s11 = smov (!%p301_p7, %s925_s11), 3 }
  0x16   : > { %s1424_s12 = smov (!%p311_p8, %s927_s12), 3  ;;  %s926_s13 = sshll.u32 %s1422_s11, 2 }
  0x17   : > { %s1273_s16 = scalar_lea.vmem %s1403_s0, %s926_s13  ;;  %s928_s17 = sshll.u32 %s1424_s12, 3 }
  0x18   : > { %s1278_s20 = scalar_lea.vmem %s1410_s7, %s928_s17 }
  0x19   : > { %327 = sbr.rel (%p931_p10) target bundleno = 32 (0x20), region = 56  ;;  %v1181_v0 = vmov (!%p931_p10), 0.0  }
  0x1a   : > { %328 = vst [vmem:[#allocation3] sm:$0x1] (!%p931_p10), %v1181_v0  ;;  %329 = vst [vmem:[#allocation4] sm:$0x1] (!%p931_p10), %v1181_v0 }
  0x20 PF: > { %v1112_v1 = vld [vmem:[%s1404_s1] sm:$0xff]   ;;  %v1182_v2 = vmov 0.0   ;;  %v1113_v3 = vld [vmem:[%s1404_s1 + $0x8] sm:$0xff]   ;;  %vm1183_vm0 = vmmov 0   ;;  %v1114_v4 = vld [vmem:[%s1404_s1 + $0x10] sm:$0xff]   ;;  %s466_s9 = sshra.s32 %s1266_s8, 4 }
  0x21   : > { %1004 = vmatprep.subr.bf16.mxu0 %v1182_v2  ;;  %1020 = vmatprep.mubr.msk.bf16.mxu0 %vm1183_vm0, %v1182_v2  ;;  %v1115_v5 = vld [vmem:[%s1404_s1 + $0x18] sm:$0xff]   ;;  %v1116_v6 = vld [vmem:[%s1404_s1 + $0x20] sm:$0xff]   ;;  %v1117_v7 = vld [vmem:[%s1404_s1 + $0x28] sm:$0xff]   ;;  %s941_s10 = sshll.u32 %s466_s9, 3 }
  0x22   : > { %1005 = vmatpush3.bf16.msra.mxu0 %v1112_v1  ;;  %v1118_v8 = vld [vmem:[%s1404_s1 + $0x30] sm:$0xff]   ;;  %v1119_v9 = vld [vmem:[%s1404_s1 + $0x38] sm:$0xff]   ;;  %v1120_v10 = vld [vmem:[%s1273_s16] sm:$0xff]   ;;  %s469_s11 = scalar_lea.vmem [#allocation2], %s941_s10 }
  0x23   : > { %1006 = vmatprep.subr.bf16.mxu0 %v1182_v2  ;;  %v443_v29 = vld [vmem:[#allocation3] sm:$0x1]  ;;  %v453_v32 = vld [vmem:[#allocation4] sm:$0x1] }
  0x26   : > { %1007 = vmatpush3.bf16.msra.mxu0 %v1113_v3 }
  0x27   : > { %1008 = vmatprep.subr.bf16.mxu0 %v1182_v2 }
  0x2a   : > { %1009 = vmatpush3.bf16.msra.mxu0 %v1114_v4 }
  0x2b   : > { %1010 = vmatprep.subr.bf16.mxu0 %v1182_v2 }
  0x2e   : > { %1011 = vmatpush3.bf16.msra.mxu0 %v1115_v5 }
  0x2f   : > { %1012 = vmatprep.subr.bf16.mxu0 %v1182_v2 }
  0x32   : > { %1013 = vmatpush3.bf16.msra.mxu0 %v1116_v6 }
  0x33   : > { %1014 = vmatprep.subr.bf16.mxu0 %v1182_v2 }
  0x36   : > { %1015 = vmatpush3.bf16.msra.mxu0 %v1117_v7 }
  0x37   : > { %1016 = vmatprep.subr.bf16.mxu0 %v1182_v2 }
  0x3a   : > { %1017 = vmatpush3.bf16.msra.mxu0 %v1118_v8 }
  0x3b   : > { %1018 = vmatprep.subr.bf16.mxu0 %v1182_v2 }
  0x3e   : > { %1019 = vmatpush3.bf16.msra.mxu0 %v1119_v9 }
  0x41   : > { %1021 = vmatmul.mubr.bf16.vlgmr.msra.gmra.mrb[0].mxu0 %v1120_v10 }
 0x114   : > { %v436_v11 = vpop.f32.mrb[0].mxu0 }
 0x115   : > { %v1022_v12 = vpop.f32.mrb[1].mxu0  ;;  %v454_v14 = vmul.f32 %v436_v11, %v436_v11 }
 0x116   : > { %v439_v13 = vpop.f32.mrb[2].mxu0 }
 0x117   : > { %v444_v15 = vadd.f32 %v439_v13, %v436_v11  ;;  %v455_v16 = vmul.f32 %v439_v13, %v439_v13  ;;  %v465_v17 = vpack.c.bf16 %v439_v13, %v436_v11  ;;  %v1023_v18 = vpop.f32.mrb[3].mxu0 }
 0x119   : > { %v445_v19 = vrot.slane %v444_v15, 4  ;;  %v456_v20 = vadd.f32 %v455_v16, %v454_v14  ;;  %470 = vst [vmem:[%s469_s11] sm:$0xff] %v465_v17 }
 0x11b   : > { %v446_v21 = vadd.f32 %v445_v19, %v444_v15  ;;  %v457_v22 = vrot.slane %v456_v20, 4 }
 0x11d   : > { %v447_v23 = vrot.slane %v446_v21, 2  ;;  %v458_v24 = vadd.f32 %v457_v22, %v456_v20 }
 0x11f   : > { %v448_v25 = vadd.f32 %v447_v23, %v446_v21  ;;  %v459_v26 = vrot.slane %v458_v24, 2 }
 0x121   : > { %v449_v27 = vrot.slane %v448_v25, 1  ;;  %v460_v28 = vadd.f32 %v459_v26, %v458_v24 }
 0x123   : > { %v450_v30 = vadd.f32 %v449_v27, %v448_v25  ;;  %v461_v31 = vrot.slane %v460_v28, 1 }
 0x125   : > { %v451_v33 = vadd.f32 %v450_v30, %v443_v29  ;;  %v462_v34 = vadd.f32 %v461_v31, %v460_v28 }
 0x127   : > { %452 = vst [vmem:[#allocation3] sm:$0x1] %v451_v33  ;;  %v463_v35 = vadd.f32 %v462_v34, %v453_v32 }
 0x129   : > { %464 = vst [vmem:[#allocation4] sm:$0x1] %v463_v35 }
 0x12a PF: > { %p942_p11 = scmp.ne.s32.totalorder %s1167_s25, 1 }
 0x12b   : > { %p943_p12 = scmp.ne.s32.totalorder (!%p942_p11), %s1163_s24, 0 }
 0x12c   : > { %474 = sbr.rel (%p942_p11) target bundleno = 602 (0x25a), region = 60 }
 0x133   : > { %478 = sbr.rel (%p943_p12) target bundleno = 336 (0x150), region = 64  ;;  %v479_v36 = vld [vmem:[#allocation3] sm:$0x1] (!%p943_p12)  ;;  %v481_v37 = vld [vmem:[#allocation4] sm:$0x1] (!%p943_p12)  ;;  %v1184_v41 = vmov (!%p943_p12), 0.0  }
 0x134   : > { %v480_v38 = vmul.f32 (!%p943_p12), 0.041666668, %v479_v36  ;;  %v482_v39 = vmul.f32 (!%p943_p12), 0.041666668, %v481_v37  ;;  %495 = vst [vmem:[#allocation3] sm:$0x1] (!%p943_p12), %v1184_v41 }
 0x135   : > { %496 = vst [vmem:[#allocation4] sm:$0x1] (!%p943_p12), %v1184_v41  ;;  %v488_v45 = vld [vmem:[%s1408_s5] sm:$0x1] (!%p943_p12) }
 0x136   : > { %v483_v40 = vmul.f32 (!%p943_p12), %v480_v38, %v480_v38  ;;  %v491_v48 = vld [vmem:[%s1409_s6] sm:$0x1] (!%p943_p12) }
 0x138   : > { %v484_v42 = vsub.f32 (!%p943_p12), %v482_v39, %v483_v40 }
 0x13a   : > { %v485_v43 = vmax.f32 %v484_v42, 0.0 }
 0x13c   : > { %v486_v44 = vadd.f32 1e-05, %v485_v43 }
 0x13e   : > { %1121 = vrsqrt.f32 %v486_v44 }
 0x148   : > { %v1122_v46 = vpop.eup %1121 }
 0x149   : > { %v489_v47 = vmul.f32 %v1122_v46, %v488_v45 }
 0x14b   : > { %490 = vst [vmem:[#allocation5] sm:$0x1] %v489_v47  ;;  %v492_v49 = vmul.f32 %v489_v47, %v480_v38 }
 0x14d   : > { %v493_v50 = vsub.f32 %v491_v48, %v492_v49 }
 0x14f   : > { %494 = vst [vmem:[#allocation6] sm:$0x1] %v493_v50 }
 0x150 PF: > { %v1123_v51 = vld [vmem:[%s1405_s2] sm:$0xff]   ;;  %v1185_v52 = vmov 0.0   ;;  %v1124_v53 = vld [vmem:[%s1405_s2 + $0x8] sm:$0xff]   ;;  %vm1186_vm1 = vmmov 0   ;;  %s497_s21 = sshra.s32 %s1266_s8, 4  ;;  %v1125_v54 = vld [vmem:[%s1405_s2 + $0x10] sm:$0xff]   ;;  %v524_v57 = vlaneseq  ;;  %v527_v4 = vstv %s1266_s8 }
 0x151   : > { %1024 = vmatprep.subr.bf16.mxu0 %v1185_v52  ;;  %1040 = vmatprep.mubr.msk.bf16.mxu0 %vm1186_vm1, %v1185_v52  ;;  %s1323_s22 = sshll.u32 %s497_s21, 3  ;;  %v1126_v55 = vld [vmem:[%s1405_s2 + $0x18] sm:$0xff]   ;;  %v1127_v60 = vld [vmem:[%s1405_s2 + $0x20] sm:$0xff]   ;;  %v1128_v1 = vld [vmem:[%s1405_s2 + $0x28] sm:$0xff]  }
 0x152   : > { %1025 = vmatpush3.bf16.msra.mxu0 %v1123_v51  ;;  %s500_s16 = scalar_lea.vmem [#allocation2], %s1323_s22  ;;  %v945_v61 = vld [vmem:[#allocation5] ss:$0 sm:$0xff]  ;;  %v525_v62 = vshrl.u32 %v524_v57, 7  ;;  %v1130_v12 = vld [vmem:[%s1405_s2 + $0x38] sm:$0xff]  }
 0x153   : > { %1026 = vmatprep.subr.bf16.mxu0 %v1185_v52  ;;  %v501_v56 = vld [vmem:[%s500_s16] sm:$0xff]  ;;  %v1129_v7 = vld [vmem:[%s1405_s2 + $0x30] sm:$0xff]  }
 0x154   : > { %v502_v58 = vunpack.c.l.bf16 %v501_v56  ;;  %v503_v59 = vunpack.c.h.bf16 %v501_v56  ;;  %v526_v3 = vadd.s32 8, %v525_v62  ;;  %v528_v8 = vadd.s32 %v527_v4, %v525_v62  ;;  %v640_v32 = vld [vmem:[#allocation3] sm:$0x1]  ;;  %v650_v35 = vld [vmem:[#allocation4] sm:$0x1] }
 0x156   : > { %1027 = vmatpush3.bf16.msra.mxu0 %v1124_v53  ;;  %v511_v63 = vmul.f32 %v945_v61, %v502_v58  ;;  %v512_v0 = vmul.f32 %v945_v61, %v503_v59  ;;  %v946_v2 = vld [vmem:[#allocation6] ss:$0 sm:$0xff]  ;;  %v529_v9 = vadd.s32 %v527_v4, %v526_v3  ;;  %vm530_vm2 = vcmp.lt.s32.totalorder %v528_v8, 24 }
 0x157   : > { %1028 = vmatprep.subr.bf16.mxu0 %v1185_v52 }
 0x158   : > { %v520_v5 = vadd.f32 %v946_v2, %v511_v63  ;;  %v521_v6 = vadd.f32 %v946_v2, %v512_v0  ;;  %vm531_vm3 = vcmp.lt.s32.totalorder %v529_v9, 24 }
 0x159   : > { %vm955_vm4 = vmpackc.low %vm531_vm3, %vm530_vm2 }
 0x15a   : > { %1029 = vmatpush3.bf16.msra.mxu0 %v1125_v54  ;;  %v522_v10 = vmax.f32 %v520_v5, 0.0  ;;  %v523_v11 = vmax.f32 %v521_v6, 0.0 }
 0x15b   : > { %1030 = vmatprep.subr.bf16.mxu0 %v1185_v52 }
 0x15c   : > { %v956_v13 = vpack.c.bf16 %v523_v11, %v522_v10 }
 0x15e   : > { %1031 = vmatpush3.bf16.msra.mxu0 %v1126_v55 }
 0x15f   : > { %1032 = vmatprep.subr.bf16.mxu0 %v1185_v52 }
 0x162   : > { %1033 = vmatpush3.bf16.msra.mxu0 %v1127_v60 }
 0x163   : > { %1034 = vmatprep.subr.bf16.mxu0 %v1185_v52 }
 0x166   : > { %1035 = vmatpush3.bf16.msra.mxu0 %v1128_v1 }
 0x167   : > { %1036 = vmatprep.subr.bf16.mxu0 %v1185_v52 }
 0x16a   : > { %1037 = vmatpush3.bf16.msra.mxu0 %v1129_v7 }
 0x16b   : > { %1038 = vmatprep.subr.bf16.mxu0 %v1185_v52 }
 0x16e   : > { %1039 = vmatpush3.bf16.msra.mxu0 %v1130_v12 }
 0x171   : > { %1041 = vmatmul.mubr.msk.bf16.vlgmr.msra.gmra.mrb[0].mxu0 %vm955_vm4, %v956_v13 }
 0x244   : > { %v633_v14 = vpop.f32.mrb[0].mxu0 }
 0x245   : > { %v1042_v15 = vpop.f32.mrb[1].mxu0  ;;  %v651_v17 = vmul.f32 %v633_v14, %v633_v14 }
 0x246   : > { %v636_v16 = vpop.f32.mrb[2].mxu0 }
 0x247   : > { %v641_v18 = vadd.f32 %v636_v16, %v633_v14  ;;  %v652_v19 = vmul.f32 %v636_v16, %v636_v16  ;;  %v662_v20 = vpack.c.bf16 %v636_v16, %v633_v14  ;;  %v1043_v21 = vpop.f32.mrb[3].mxu0 }
 0x249   : > { %v642_v22 = vrot.slane %v641_v18, 4  ;;  %v653_v23 = vadd.f32 %v652_v19, %v651_v17  ;;  %663 = vst [vmem:[%s500_s16] sm:$0xff] %v662_v20 }
 0x24b   : > { %v643_v24 = vadd.f32 %v642_v22, %v641_v18  ;;  %v654_v25 = vrot.slane %v653_v23, 4 }
 0x24d   : > { %v644_v26 = vrot.slane %v643_v24, 2  ;;  %v655_v27 = vadd.f32 %v654_v25, %v653_v23 }
 0x24f   : > { %v645_v28 = vadd.f32 %v644_v26, %v643_v24  ;;  %v656_v29 = vrot.slane %v655_v27, 2 }
 0x251   : > { %v646_v30 = vrot.slane %v645_v28, 1  ;;  %v657_v31 = vadd.f32 %v656_v29, %v655_v27 }
 0x253   : > { %v647_v33 = vadd.f32 %v646_v30, %v645_v28  ;;  %v658_v34 = vrot.slane %v657_v31, 1 }
 0x255   : > { %v648_v36 = vadd.f32 %v647_v33, %v640_v32  ;;  %v659_v37 = vadd.f32 %v658_v34, %v657_v31 }
 0x257   : > { %649 = vst [vmem:[#allocation3] sm:$0x1] %v648_v36  ;;  %v660_v38 = vadd.f32 %v659_v37, %v650_v35 }
 0x259   : > { %661 = vst [vmem:[#allocation4] sm:$0x1] %v660_v38 }
 0x25a PF: > { %p958_p13 = scmp.ne.s32.totalorder %s1167_s25, 2 }
 0x25b   : > { %p959_p0 = scmp.ne.s32.totalorder (!%p958_p13), %s1163_s24, 0 }
 0x25c   : > { %667 = sbr.rel (%p958_p13) target bundleno = 890 (0x37a), region = 68 }
 0x263   : > { %671 = sbr.rel (%p959_p0) target bundleno = 640 (0x280), region = 72  ;;  %v672_v39 = vld [vmem:[#allocation3] sm:$0x1] (!%p959_p0)  ;;  %v674_v40 = vld [vmem:[#allocation4] sm:$0x1] (!%p959_p0) }
 0x264   : > { %v673_v41 = vmul.f32 (!%p959_p0), 0.041666668, %v672_v39  ;;  %v675_v42 = vmul.f32 (!%p959_p0), 0.041666668, %v674_v40  ;;  %v681_v47 = vld [vmem:[%s1408_s5 + $0x1] sm:$0x1] (!%p959_p0) }
 0x265   : > { %v684_v50 = vld [vmem:[%s1409_s6 + $0x1] sm:$0x1] (!%p959_p0) }
 0x266   : > { %v676_v43 = vmul.f32 (!%p959_p0), %v673_v41, %v673_v41 }
 0x268   : > { %v677_v44 = vsub.f32 (!%p959_p0), %v675_v42, %v676_v43 }
 0x26a   : > { %v678_v45 = vmax.f32 %v677_v44, 0.0 }
 0x26c   : > { %v679_v46 = vadd.f32 1e-05, %v678_v45 }
 0x26e   : > { %1131 = vrsqrt.f32 %v679_v46 }
 0x278   : > { %v1132_v48 = vpop.eup %1131 }
 0x279   : > { %v682_v49 = vmul.f32 %v1132_v48, %v681_v47 }
 0x27b   : > { %683 = vst [vmem:[#allocation5] sm:$0x1] %v682_v49  ;;  %v685_v51 = vmul.f32 %v682_v49, %v673_v41 }
 0x27d   : > { %v686_v52 = vsub.f32 %v684_v50, %v685_v51 }
 0x27f   : > { %687 = vst [vmem:[#allocation6] sm:$0x1] %v686_v52 }
 0x280 PF: > { %v1133_v53 = vld [vmem:[%s1406_s3] sm:$0xff]   ;;  %v1187_v54 = vmov 0.0   ;;  %v1134_v55 = vld [vmem:[%s1406_s3 + $0x8] sm:$0xff]   ;;  %vm1188_vm5 = vmmov 0   ;;  %s688_s12 = sshra.s32 %s1266_s8, 4  ;;  %v1135_v56 = vld [vmem:[%s1406_s3 + $0x10] sm:$0xff]   ;;  %v715_v59 = vlaneseq  ;;  %v718_v6 = vstv %s1266_s8 }
 0x281   : > { %1044 = vmatprep.subr.bf16.mxu0 %v1187_v54  ;;  %1060 = vmatprep.mubr.msk.bf16.mxu0 %vm1188_vm5, %v1187_v54  ;;  %s960_s13 = sshll.u32 %s688_s12, 3  ;;  %v1136_v57 = vld [vmem:[%s1406_s3 + $0x18] sm:$0xff]   ;;  %v1137_v62 = vld [vmem:[%s1406_s3 + $0x20] sm:$0xff]   ;;  %v1138_v3 = vld [vmem:[%s1406_s3 + $0x28] sm:$0xff]  }
 0x282   : > { %1045 = vmatpush3.bf16.msra.mxu0 %v1133_v53  ;;  %s691_s19 = scalar_lea.vmem [#allocation2], %s960_s13  ;;  %v961_v63 = vld [vmem:[#allocation5] ss:$0 sm:$0xff]  ;;  %v716_v0 = vshrl.u32 %v715_v59, 7  ;;  %v1140_v14 = vld [vmem:[%s1406_s3 + $0x38] sm:$0xff]  }
 0x283   : > { %1046 = vmatprep.subr.bf16.mxu0 %v1187_v54  ;;  %v692_v58 = vld [vmem:[%s691_s19] sm:$0xff]  ;;  %v1139_v9 = vld [vmem:[%s1406_s3 + $0x30] sm:$0xff]  }
 0x284   : > { %v693_v60 = vunpack.c.l.bf16 %v692_v58  ;;  %v694_v61 = vunpack.c.h.bf16 %v692_v58  ;;  %v717_v5 = vadd.s32 8, %v716_v0  ;;  %v719_v10 = vadd.s32 %v718_v6, %v716_v0  ;;  %v963_v16 = vld [vmem:[%s1407_s4] ss:$0 sm:$0xff] }
 0x286   : > { %1047 = vmatpush3.bf16.msra.mxu0 %v1134_v55  ;;  %v702_v1 = vmul.f32 %v961_v63, %v693_v60  ;;  %v703_v2 = vmul.f32 %v961_v63, %v694_v61  ;;  %v962_v4 = vld [vmem:[#allocation6] ss:$0 sm:$0xff]  ;;  %v720_v11 = vadd.s32 %v718_v6, %v717_v5  ;;  %vm721_vm6 = vcmp.lt.s32.totalorder %v719_v10, 24 }
 0x287   : > { %1048 = vmatprep.subr.bf16.mxu0 %v1187_v54 }
 0x288   : > { %v711_v7 = vadd.f32 %v962_v4, %v702_v1  ;;  %v712_v8 = vadd.f32 %v962_v4, %v703_v2  ;;  %vm722_vm7 = vcmp.lt.s32.totalorder %v720_v11, 24 }
 0x289   : > { %vm972_vm8 = vmpackc.low %vm722_vm7, %vm721_vm6 }
 0x28a   : > { %1049 = vmatpush3.bf16.msra.mxu0 %v1135_v56  ;;  %v713_v12 = vmax.f32 %v711_v7, 0.0  ;;  %v714_v13 = vmax.f32 %v712_v8, 0.0 }
 0x28b   : > { %1050 = vmatprep.subr.bf16.mxu0 %v1187_v54 }
 0x28c   : > { %v973_v15 = vpack.c.bf16 %v714_v13, %v713_v12 }
 0x28e   : > { %1051 = vmatpush3.bf16.msra.mxu0 %v1136_v57 }
 0x28f   : > { %1052 = vmatprep.subr.bf16.mxu0 %v1187_v54 }
 0x292   : > { %1053 = vmatpush3.bf16.msra.mxu0 %v1137_v62 }
 0x293   : > { %1054 = vmatprep.subr.bf16.mxu0 %v1187_v54 }
 0x296   : > { %1055 = vmatpush3.bf16.msra.mxu0 %v1138_v3 }
 0x297   : > { %1056 = vmatprep.subr.bf16.mxu0 %v1187_v54 }
 0x29a   : > { %1057 = vmatpush3.bf16.msra.mxu0 %v1139_v9 }
 0x29b   : > { %1058 = vmatprep.subr.bf16.mxu0 %v1187_v54 }
 0x29e   : > { %1059 = vmatpush3.bf16.msra.mxu0 %v1140_v14 }
 0x2a1   : > { %1061 = vmatmul.mubr.msk.bf16.vlgmr.msra.gmra.mrb[0].mxu0 %vm972_vm8, %v973_v15 }
 0x374   : > { %v831_v17 = vpop.f32.mrb[0].mxu0 }
 0x375   : > { %v832_v18 = vadd.f32 %v963_v16, %v831_v17  ;;  %v1062_v19 = vpop.f32.mrb[1].mxu0 }
 0x376   : > { %v834_v20 = vpop.f32.mrb[2].mxu0 }
 0x377   : > { %838 = vst [vmem:[%s1278_s20] sm:$0xff] %v832_v18  ;;  %v835_v21 = vadd.f32 %v963_v16, %v834_v20  ;;  %v1063_v22 = vpop.f32.mrb[3].mxu0 }
 0x379   : > { %839 = vst [vmem:[%s1278_s20 + $0x8] sm:$0xff] %v835_v21 }
 0x37a PF: > { %s17_s28 = sadd.s32 1, %s1179_s28   ;;  %s1411_s24 = smov %s1171_s26 }
 0x37b   : > { %p14_p1 = scmp.ge.s32.totalorder %s17_s28, 8   ;;  %s1412_s25 = smov %s1175_s27 }
 0x37c   : > { %s1413_s26 = smov %s1416_s29  ;;  %s1414_s27 = smov %s1420_s30 }
 0x37d   :  { %16 = sbr.rel (!%p14_p1) target bundleno = 3 (0x3), region = 105 }

</bundles_post_ra>
